<compile_context>
chip_gen: v7x
topology: tpu7x:2x2x1
jax: 0.10.0
libtpu: 0.0.40
codegen_flags: <defaults>
</compile_context>

<pallas_src>
import jax
import jax.numpy as jnp
from jax.experimental import pallas as pl
from jax.experimental.pallas import tpu as pltpu

IN_FEATURES = 4 * 16 * 16   # stand-in for Drebin's 545334 flattened features
HIDDEN = 200
OUT = 2
OUT_PAD = 128               # lane-dense output stores; wrapper slices [:, :2]


def _round_up(v, m):
    return (v + m - 1) // m * m


def drebin_mlp_kernel(x_ref, w1_ref, b1_ref, w2_ref, b2_ref,
                      w3_ref, b3_ref, w4_ref, b4_ref, out_ref, acc_ref):
    k = pl.program_id(1)

    # Zero the layer-1 accumulator at the first K step.
    @pl.when(k == 0)
    def _():
        acc_ref[...] = jnp.zeros_like(acc_ref)

    # Streaming layer-1 partial product: bf16 inputs, f32 accumulation (MXU).
    acc_ref[...] += jnp.dot(x_ref[...], w1_ref[...],
                            preferred_element_type=jnp.float32)

    # Epilogue: bias + ReLU + layers 2-4 only after the last K step.
    @pl.when(k == pl.num_programs(1) - 1)
    def _():
        h = jnp.maximum(acc_ref[...] + b1_ref[...], 0.0)            # dens1 + relu1
        h = jnp.maximum(jnp.dot(h, w2_ref[...],
                                preferred_element_type=jnp.float32)
                        + b2_ref[...], 0.0)                         # dens2 + relu2
        h = jnp.maximum(jnp.dot(h, w3_ref[...],
                                preferred_element_type=jnp.float32)
                        + b3_ref[...], 0.0)                         # dens3 + relu3
        y = jnp.dot(h, w4_ref[...],
                    preferred_element_type=jnp.float32) + b4_ref[...]   # dens4
        out_ref[...] = y.astype(out_ref.dtype)


def drebin_forward(x, params, *, k_tile=8192, batch_tile=512):
    """x: any (B, ...) float array; flattened to (B, F) like torch .view."""
    w1, b1, w2, b2, w3, b3, w4, b4 = params

    B = x.shape[0]
    # Direct bf16 cast of the flattened input (no f32 intermediate copy).
    xb = x.reshape(B, -1).astype(jnp.bfloat16)
    F = xb.shape[1]

    # --- padded geometry -------------------------------------------------
    # Feature axis: round up to 128 lanes, then pick a K tile (multiple of
    # 128) that keeps the extra padding below 128*nk columns (<1% at the real
    # Drebin width) rather than padding up to a full K tile.
    F128 = _round_up(F, 128)
    m = F128 // 128                                     # 128-lane units
    units_per_tile = max(1, min(_round_up(k_tile, 128) // 128, m))
    nk = -(-m // units_per_tile)                        # ceil
    kt = 128 * (-(-m // nk))                            # ceil(m / nk) units
    Fp = nk * kt

    # Batch axis: sublane multiple of 8, tiled on the outer "parallel" axis.
    tb = _round_up(min(batch_tile, _round_up(B, 8)), 8)
    Bp = _round_up(B, tb)
    nb = Bp // tb

    # --- pad + cast operands (zeros are numerically inert) ---------------
    # In production the padded/cast weights would be prepared once, offline.
    xp = jnp.pad(xb, ((0, Bp - B), (0, Fp - F)))
    w1p = jnp.pad(w1.astype(jnp.bfloat16), ((0, Fp - F), (0, 0)))   # (Fp, 200)
    # Layers 2-3 + biases are used at their natural 200 width (full-array
    # blocks).  Only the final layer is padded to the 128-lane output.
    b1p = b1.astype(jnp.float32)                                    # (1, 200)
    w2p = w2.astype(jnp.float32)                                    # (200, 200)
    b2p = b2.astype(jnp.float32)
    w3p = w3.astype(jnp.float32)
    b3p = b3.astype(jnp.float32)
    w4p = jnp.pad(w4.astype(jnp.float32), ((0, 0), (0, OUT_PAD - OUT)))
    b4p = jnp.pad(b4.astype(jnp.float32), ((0, 0), (0, OUT_PAD - OUT)))

    def rep(arr):
        shp = arr.shape
        # TODO(synk): pipeline_mode=pl.Buffered(1) would single-buffer these
        # grid-invariant tensors (small VMEM headroom win on v7x).
        return pl.BlockSpec(shp, lambda b, k: (0,) * len(shp))

    # --- VMEM budget ------------------------------------------------------
    # Estimate with the 200-wide tensors lane-padded to 256 (their in-VMEM
    # footprint), double-buffered streamed tiles + resident small weights.
    H_VM = 256
    bytes_stream = 2 * (tb * kt * 2 + kt * H_VM * 2)                # bf16 x, w1
    bytes_small = 2 * 4 * (2 * H_VM * H_VM + H_VM * OUT_PAD
                           + 3 * H_VM + OUT_PAD)
    bytes_out = 2 * tb * OUT_PAD * 4
    bytes_acc = tb * H_VM * 4
    vmem_need = bytes_stream + bytes_small + bytes_out + bytes_acc

    try:
        vmem_physical = int(pltpu.get_tpu_info().vmem_capacity_bytes)
    except Exception:
        vmem_physical = 64 * 1024 * 1024            # conservative (v7x-sized)
    vmem_ceiling = int(0.75 * vmem_physical)
    if vmem_need > vmem_ceiling:
        raise ValueError(
            f"Requested tiles need ~{vmem_need >> 20} MiB VMEM but only "
            f"~{vmem_ceiling >> 20} MiB is usable on this TPU; reduce "
            f"batch_tile ({batch_tile}) and/or k_tile ({k_tile}).")
    vmem_limit = min(max(int(1.25 * vmem_need), 16 * 1024 * 1024), vmem_ceiling)

    # TODO(synk): on v7x (2 TensorCores), small-batch inference leaves a core
    # idle; a cross-core K-split (each core streams half of w1 into its own
    # partial accumulator) or fp8/int8 w1 quantization would further cut the
    # dominant w1 stream.  Not implemented here.
    out_padded = pl.pallas_call(
        drebin_mlp_kernel,
        out_shape=jax.ShapeDtypeStruct((Bp, OUT_PAD), jnp.float32),
        grid_spec=pltpu.PrefetchScalarGridSpec(
            num_scalar_prefetch=0,
            grid=(nb, nk),                             # batch (parallel), K (last)
            in_specs=[
                pl.BlockSpec((tb, kt), lambda b, k: (b, k)),          # x
                pl.BlockSpec((kt, HIDDEN), lambda b, k: (k, 0)),      # w1 (200 wide)
                rep(b1p),
                rep(w2p), rep(b2p),
                rep(w3p), rep(b3p),
                rep(w4p), rep(b4p),
            ],
            out_specs=pl.BlockSpec((tb, OUT_PAD), lambda b, k: (b, 0)),
            scratch_shapes=[pltpu.VMEM((tb, HIDDEN), jnp.float32)],
        ),
        compiler_params=pltpu.CompilerParams(
            dimension_semantics=("parallel", "arbitrary"),
            vmem_limit_bytes=vmem_limit),
    )(xp, w1p, b1p, w2p, b2p, w3p, b3p, w4p, b4p)

    # Strip batch / output-lane padding.
    return out_padded[:B, :OUT]


def init_params(key):
    """Deterministic init mimicking torch.nn.Linear defaults (U[-1/sqrt(fan_in), ...])."""
    def linear(key, fan_in, fan_out):
        kw, kb = jax.random.split(key)
        bound = 1.0 / jnp.sqrt(float(fan_in))
        w = jax.random.uniform(kw, (fan_in, fan_out), jnp.float32, -bound, bound)
        b = jax.random.uniform(kb, (1, fan_out), jnp.float32, -bound, bound)
        return w, b

    k1, k2, k3, k4 = jax.random.split(key, 4)
    w1, b1 = linear(k1, IN_FEATURES, HIDDEN)
    w2, b2 = linear(k2, HIDDEN, HIDDEN)
    w3, b3 = linear(k3, HIDDEN, HIDDEN)
    w4, b4 = linear(k4, HIDDEN, OUT)
    return (w1, b1, w2, b2, w3, b3, w4, b4)


def drebin_forward_ref(x, params):
    """Pure-JAX reference mirroring the kernel's dtype policy (bf16 layer-1)."""
    w1, b1, w2, b2, w3, b3, w4, b4 = params
    h = x.reshape(x.shape[0], -1)
    h = jnp.dot(h.astype(jnp.bfloat16), w1.astype(jnp.bfloat16),
                preferred_element_type=jnp.float32) + b1
    h = jnp.maximum(h, 0.0)
    h = jnp.maximum(h @ w2 + b2, 0.0)
    h = jnp.maximum(h @ w3 + b3, 0.0)
    return h @ w4 + b4


# TODO(synk): forward_act (per-layer activation list) is not exposed by this
# fused kernel; only the forward() semantics are implemented.

if __name__ == "__main__":
    key = jax.random.PRNGKey(0)
    kx, kp = jax.random.split(key)

    # small NCHW-style input whose flattened width matches IN_FEATURES
    x = jax.random.normal(kx, (2, 4, 16, 16), dtype=jnp.float32)
    params = init_params(kp)

    # k_tile=512 so the small 1024-feature test exercises >1 K step.
    out = drebin_forward(x, params, k_tile=512)
    out = jax.block_until_ready(out)

    ref = drebin_forward_ref(x, params)
    assert out.shape == (2, OUT)
    assert jnp.allclose(out, ref, atol=2e-3, rtol=2e-3), (
        f"max abs err = {jnp.max(jnp.abs(out - ref))}")

    print("KERNEL_OK")
</pallas_src>

<mosaic_0001>
module attributes {stable_mosaic.version = 11 : i64} {
  func.func @drebin_mlp_kernel(%arg0: i32, %arg1: i32, %arg2: memref<8x512xbf16, #tpu.memory_space<vmem>>, %arg3: memref<512x200xbf16, #tpu.memory_space<vmem>>, %arg4: memref<1x200xf32, #tpu.memory_space<vmem>>, %arg5: memref<200x200xf32, #tpu.memory_space<vmem>>, %arg6: memref<1x200xf32, #tpu.memory_space<vmem>>, %arg7: memref<200x200xf32, #tpu.memory_space<vmem>>, %arg8: memref<1x200xf32, #tpu.memory_space<vmem>>, %arg9: memref<200x128xf32, #tpu.memory_space<vmem>>, %arg10: memref<1x128xf32, #tpu.memory_space<vmem>>, %arg11: memref<8x128xf32, #tpu.memory_space<vmem>>, %arg12: memref<8x200xf32, #tpu.memory_space<vmem>>) attributes {dimension_semantics = [#tpu.dimension_semantics<parallel>, #tpu.dimension_semantics<arbitrary>], iteration_bounds = array<i64: 1, 2>, scalar_prefetch = 0 : i64, scratch_operands = 1 : i64, tpu.core_type = #tpu.core_type<tc>, window_params = [{transform_indices = @transform_0, window_bounds = array<i64: 8, 512>}, {transform_indices = @transform_1, window_bounds = array<i64: 512, 200>}, {pipeline_mode = #tpu.pipeline_mode<synchronous>, transform_indices = @transform_2, window_bounds = array<i64: 1, 200>}, {pipeline_mode = #tpu.pipeline_mode<synchronous>, transform_indices = @transform_3, window_bounds = array<i64: 200, 200>}, {pipeline_mode = #tpu.pipeline_mode<synchronous>, transform_indices = @transform_4, window_bounds = array<i64: 1, 200>}, {pipeline_mode = #tpu.pipeline_mode<synchronous>, transform_indices = @transform_5, window_bounds = array<i64: 200, 200>}, {pipeline_mode = #tpu.pipeline_mode<synchronous>, transform_indices = @transform_6, window_bounds = array<i64: 1, 200>}, {pipeline_mode = #tpu.pipeline_mode<synchronous>, transform_indices = @transform_7, window_bounds = array<i64: 200, 128>}, {pipeline_mode = #tpu.pipeline_mode<synchronous>, transform_indices = @transform_8, window_bounds = array<i64: 1, 128>}, {transform_indices = @transform_9, window_bounds = array<i64: 8, 128>}]} {
    %c0_i32 = arith.constant 0 : i32
    %0 = arith.cmpi eq, %arg1, %c0_i32 : i32
    %1 = arith.extui %0 : i1 to i32
    %c0_i32_0 = arith.constant 0 : i32
    %2 = arith.cmpi ne, %1, %c0_i32_0 : i32
    scf.if %2 {
      %cst_9 = arith.constant 0.000000e+00 : f32
      %12 = vector.broadcast %cst_9 : f32 to vector<8x200xf32>
      %c0_10 = arith.constant 0 : index
      %c0_11 = arith.constant 0 : index
      %13 = vector.load %arg12[%c0_10, %c0_11] : memref<8x200xf32, #tpu.memory_space<vmem>>, vector<8x200xf32>
      tpu.vector_store %arg12[%c0_10, %c0_11], %12 {strides = array<i32>} : memref<8x200xf32, #tpu.memory_space<vmem>>, vector<8x200xf32>,
    } else {
    }
    %c0 = arith.constant 0 : index
    %c0_1 = arith.constant 0 : index
    %3 = vector.load %arg12[%c0, %c0_1] : memref<8x200xf32, #tpu.memory_space<vmem>>, vector<8x200xf32>
    %c0_2 = arith.constant 0 : index
    %c0_3 = arith.constant 0 : index
    %4 = vector.load %arg2[%c0_2, %c0_3] : memref<8x512xbf16, #tpu.memory_space<vmem>>, vector<8x512xbf16>
    %c0_4 = arith.constant 0 : index
    %c0_5 = arith.constant 0 : index
    %5 = vector.load %arg3[%c0_4, %c0_5] : memref<512x200xbf16, #tpu.memory_space<vmem>>, vector<512x200xbf16>
    %cst = arith.constant dense<0.000000e+00> : vector<8x200xf32>
    %6 = tpu.matmul %4, %5, %cst {dimension_numbers = #tpu.dot_dimension_numbers<[1], [0], [0], [1], [0, 0, 1, 1], [], []>} : vector<8x512xbf16>, vector<512x200xbf16>, vector<8x200xf32> -> vector<8x200xf32>
    %7 = arith.addf %3, %6 : vector<8x200xf32>
    %c0_6 = arith.constant 0 : index
    %c0_7 = arith.constant 0 : index
    %8 = vector.load %arg12[%c0_6, %c0_7] : memref<8x200xf32, #tpu.memory_space<vmem>>, vector<8x200xf32>
    tpu.vector_store %arg12[%c0_6, %c0_7], %7 {strides = array<i32>} : memref<8x200xf32, #tpu.memory_space<vmem>>, vector<8x200xf32>,
    %c1_i32 = arith.constant 1 : i32
    %9 = arith.cmpi eq, %arg1, %c1_i32 : i32
    %10 = arith.extui %9 : i1 to i32
    %c0_i32_8 = arith.constant 0 : i32
    %11 = arith.cmpi ne, %10, %c0_i32_8 : i32
    scf.if %11 {
      %c0_9 = arith.constant 0 : index
      %c0_10 = arith.constant 0 : index
      %12 = vector.load %arg12[%c0_9, %c0_10] : memref<8x200xf32, #tpu.memory_space<vmem>>, vector<8x200xf32>
      %c0_11 = arith.constant 0 : index
      %c0_12 = arith.constant 0 : index
      %13 = vector.load %arg4[%c0_11, %c0_12] : memref<1x200xf32, #tpu.memory_space<vmem>>, vector<1x200xf32>
      %14 = vector.broadcast %13 : vector<1x200xf32> to vector<8x200xf32>
      %15 = arith.addf %12, %14 : vector<8x200xf32>
      %cst_13 = arith.constant 0.000000e+00 : f32
      %16 = vector.broadcast %cst_13 : f32 to vector<8x200xf32>
      %17 = arith.maximumf %15, %16 : vector<8x200xf32>
      %c0_14 = arith.constant 0 : index
      %c0_15 = arith.constant 0 : index
      %18 = vector.load %arg5[%c0_14, %c0_15] : memref<200x200xf32, #tpu.memory_space<vmem>>, vector<200x200xf32>
      %cst_16 = arith.constant dense<0.000000e+00> : vector<8x200xf32>
      %19 = tpu.matmul %17, %18, %cst_16 {dimension_numbers = #tpu.dot_dimension_numbers<[1], [0], [0], [1], [0, 0, 1, 1], [], []>} : vector<8x200xf32>, vector<200x200xf32>, vector<8x200xf32> -> vector<8x200xf32>
      %c0_17 = arith.constant 0 : index
      %c0_18 = arith.constant 0 : index
      %20 = vector.load %arg6[%c0_17, %c0_18] : memref<1x200xf32, #tpu.memory_space<vmem>>, vector<1x200xf32>
      %21 = vector.broadcast %20 : vector<1x200xf32> to vector<8x200xf32>
      %22 = arith.addf %19, %21 : vector<8x200xf32>
      %cst_19 = arith.constant 0.000000e+00 : f32
      %23 = vector.broadcast %cst_19 : f32 to vector<8x200xf32>
      %24 = arith.maximumf %22, %23 : vector<8x200xf32>
      %c0_20 = arith.constant 0 : index
      %c0_21 = arith.constant 0 : index
      %25 = vector.load %arg7[%c0_20, %c0_21] : memref<200x200xf32, #tpu.memory_space<vmem>>, vector<200x200xf32>
      %cst_22 = arith.constant dense<0.000000e+00> : vector<8x200xf32>
      %26 = tpu.matmul %24, %25, %cst_22 {dimension_numbers = #tpu.dot_dimension_numbers<[1], [0], [0], [1], [0, 0, 1, 1], [], []>} : vector<8x200xf32>, vector<200x200xf32>, vector<8x200xf32> -> vector<8x200xf32>
      %c0_23 = arith.constant 0 : index
      %c0_24 = arith.constant 0 : index
      %27 = vector.load %arg8[%c0_23, %c0_24] : memref<1x200xf32, #tpu.memory_space<vmem>>, vector<1x200xf32>
      %28 = vector.broadcast %27 : vector<1x200xf32> to vector<8x200xf32>
      %29 = arith.addf %26, %28 : vector<8x200xf32>
      %cst_25 = arith.constant 0.000000e+00 : f32
      %30 = vector.broadcast %cst_25 : f32 to vector<8x200xf32>
      %31 = arith.maximumf %29, %30 : vector<8x200xf32>
      %c0_26 = arith.constant 0 : index
      %c0_27 = arith.constant 0 : index
      %32 = vector.load %arg9[%c0_26, %c0_27] : memref<200x128xf32, #tpu.memory_space<vmem>>, vector<200x128xf32>
      %cst_28 = arith.constant dense<0.000000e+00> : vector<8x128xf32>
      %33 = tpu.matmul %31, %32, %cst_28 {dimension_numbers = #tpu.dot_dimension_numbers<[1], [0], [0], [1], [0, 0, 1, 1], [], []>} : vector<8x200xf32>, vector<200x128xf32>, vector<8x128xf32> -> vector<8x128xf32>
      %c0_29 = arith.constant 0 : index
      %c0_30 = arith.constant 0 : index
      %34 = vector.load %arg10[%c0_29, %c0_30] : memref<1x128xf32, #tpu.memory_space<vmem>>, vector<1x128xf32>
      %35 = vector.broadcast %34 : vector<1x128xf32> to vector<8x128xf32>
      %36 = arith.addf %33, %35 : vector<8x128xf32>
      %c0_31 = arith.constant 0 : index
      %c0_32 = arith.constant 0 : index
      %37 = vector.load %arg11[%c0_31, %c0_32] : memref<8x128xf32, #tpu.memory_space<vmem>>, vector<8x128xf32>
      tpu.vector_store %arg11[%c0_31, %c0_32], %36 {strides = array<i32>} : memref<8x128xf32, #tpu.memory_space<vmem>>, vector<8x128xf32>,
    } else {
    }
    return
  }
  func.func @transform_0(%arg0: i32, %arg1: i32) -> (i32, i32) {
    %c0_i32 = arith.constant 0 : i32
    return %arg0, %arg1 : i32, i32
  }
  func.func @transform_1(%arg0: i32, %arg1: i32) -> (i32, i32) {
    %c0_i32 = arith.constant 0 : i32
    %c0_i32_0 = arith.constant 0 : i32
    return %arg1, %c0_i32 : i32, i32
  }
  func.func @transform_2(%arg0: i32, %arg1: i32) -> (i32, i32) {
    %c0_i32 = arith.constant 0 : i32
    %c0_i32_0 = arith.constant 0 : i32
    %c0_i32_1 = arith.constant 0 : i32
    return %c0_i32, %c0_i32_0 : i32, i32
  }
  func.func @transform_3(%arg0: i32, %arg1: i32) -> (i32, i32) {
    %c0_i32 = arith.constant 0 : i32
    %c0_i32_0 = arith.constant 0 : i32
    %c0_i32_1 = arith.constant 0 : i32
    return %c0_i32, %c0_i32_0 : i32, i32
  }
  func.func @transform_4(%arg0: i32, %arg1: i32) -> (i32, i32) {
    %c0_i32 = arith.constant 0 : i32
    %c0_i32_0 = arith.constant 0 : i32
    %c0_i32_1 = arith.constant 0 : i32
    return %c0_i32, %c0_i32_0 : i32, i32
  }
  func.func @transform_5(%arg0: i32, %arg1: i32) -> (i32, i32) {
    %c0_i32 = arith.constant 0 : i32
    %c0_i32_0 = arith.constant 0 : i32
    %c0_i32_1 = arith.constant 0 : i32
    return %c0_i32, %c0_i32_0 : i32, i32
  }
  func.func @transform_6(%arg0: i32, %arg1: i32) -> (i32, i32) {
    %c0_i32 = arith.constant 0 : i32
    %c0_i32_0 = arith.constant 0 : i32
    %c0_i32_1 = arith.constant 0 : i32
    return %c0_i32, %c0_i32_0 : i32, i32
  }
  func.func @transform_7(%arg0: i32, %arg1: i32) -> (i32, i32) {
    %c0_i32 = arith.constant 0 : i32
    %c0_i32_0 = arith.constant 0 : i32
    %c0_i32_1 = arith.constant 0 : i32
    return %c0_i32, %c0_i32_0 : i32, i32
  }
  func.func @transform_8(%arg0: i32, %arg1: i32) -> (i32, i32) {
    %c0_i32 = arith.constant 0 : i32
    %c0_i32_0 = arith.constant 0 : i32
    %c0_i32_1 = arith.constant 0 : i32
    return %c0_i32, %c0_i32_0 : i32, i32
  }
  func.func @transform_9(%arg0: i32, %arg1: i32) -> (i32, i32) {
    %c0_i32 = arith.constant 0 : i32
    %c0_i32_0 = arith.constant 0 : i32
    return %arg0, %c0_i32 : i32, i32
  }
}

</mosaic_0001>

<bundles_post_ra>
// kernel: tpu_custom_call.1
= control target key start
LH: loop header
LB: loop body
LE: loop exit
PB: predicated region body
PF: predicated region fallthrough
CT: control target
= control target key end

     0   :  { %14 = vsyncpa [#allocation4], 0  ;;  %s1816_s30 = smov 0   ;;  %s1818_s10 = smov 0   ;;  %s2363_s0 = inlined_call_operand.vmem [shape: bf16[8,1024], index: 0, kind: input, shape index: {}]   ;;  %s2364_s1 = inlined_call_operand.vmem [shape: bf16[1024,200], index: 1, kind: input, shape index: {}]   ;;  %s2365_s2 = inlined_call_operand.vmem [shape: f32[1,200], index: 2, kind: input, shape index: {}]   ;;  %s2366_s3 = inlined_call_operand.vmem [shape: f32[200,200], index: 3, kind: input, shape index: {}]   ;;  %s2367_s4 = inlined_call_operand.vmem [shape: f32[1,200], index: 4, kind: input, shape index: {}]   ;;  %s2368_s5 = inlined_call_operand.vmem [shape: f32[200,200], index: 5, kind: input, shape index: {}]   ;;  %s2369_s6 = inlined_call_operand.vmem [shape: f32[1,200], index: 6, kind: input, shape index: {}]   ;;  %s2370_s7 = inlined_call_operand.vmem [shape: f32[200,128], index: 7, kind: input, shape index: {}]   ;;  %s2371_s8 = inlined_call_operand.vmem [shape: f32[1,128], index: 8, kind: input, shape index: {}]   ;;  %s2372_s9 = inlined_call_operand.hbm [shape: f32[8,128], index: 9, kind: output, shape index: {}]  }
   0x1   :  { %s1820_s11 = smov 0  }
   0x2 LB: > { %s1354_s12 = sadd.s32 4294967295, %s1760_s11   ;;  %s29_s13 = sadd.s32 1, %s1756_s10  ;;  %s1760_s11 = sphi %s1820_s11, %s20_s11   ;;  %s1756_s10 = sphi %s1818_s10, %s2375_s10   ;;  %s1752_s30 = sphi %s1816_s30, %s2374_s30  }
   0x3   : > { %p30_p0 = scmp.ge.s32.totalorder %s29_s13, 2  ;;  %p1357_p1 = scmp.ge.s32.totalorder %s1760_s11, 1 }
   0x4   : > { %p319_p2 = scmp.lt.s32.totalorder %s1760_s11, 3 }
   0x5   : > { %s2377_s13 = smov (%p30_p0, %s29_s13), 0 }
   0x6   : > { %p320_p3 = pnand %p1357_p1, %p319_p2 }
   0x7   : > { %s1358_s14 = sshll.u32 (!%p320_p3), %s1752_s30, 2  ;;  %s1360_s15 = sshll.u32 (!%p320_p3), %s1752_s30, 6 }
   0x8   : > { %323 = sbr.rel (%p320_p3) target bundleno = 1011 (0x3f3), region = 56  ;;  %p363_p4 = scmp.lt.s32.totalorder (!%p320_p3), %s1358_s14, 7 }
   0x9   : > { %p371_p5 = scmp.lt.s32.totalorder (!%p320_p3), %s1360_s15, 127  ;;  %p1363_p6 = scmp.ne.s32.totalorder (!%p320_p3), %s1752_s30, 0 }
   0xf   : > { %s2379_s14 = smov (!%p363_p4, %s1358_s14), 7  ;;  %s2381_s15 = smov (!%p371_p5, %s1360_s15), 127 }
  0x10   : > { %s1359_s16 = sshll.u32 %s2379_s14, 2  ;;  %s1441_s20 = sshll.u32 %s2381_s15, 3  ;;  %vm382_vm0 = vcmask (!%p1363_p6), 588800   ;;  %v1762_v0 = vmov (!%p1363_p6), 0.0  }
  0x11   : > { %s1842_s19 = scalar_lea.vmem %s2363_s0, %s1359_s16  ;;  %s1847_s23 = scalar_lea.vmem %s2364_s1, %s1441_s20  ;;  %381 = vst [vmem:[#allocation2] sm:$0xff] (!%p1363_p6), %v1762_v0  ;;  %383 = vst.msk [vmem:[#allocation2 + $0x8] sm:$0xff] (!%p1363_p6), %vm382_vm0, %v1762_v0 }
  0x12   : > { %380 = sbr.rel (%p1363_p6) target bundleno = 25 (0x19), region = 60 }
  0x19 PF: > { %v1608_v1 = vld [vmem:[%s1847_s23 + $0x4] ss:$8 sps:$4 sm:$0xff]   ;;  %v1612_v3 = vld [vmem:[%s1847_s23] ss:$8 sps:$4 sm:$0xff]   ;;  %v1614_v5 = vld [vmem:[%s1847_s23 + $0x14] ss:$8 sps:$4 sm:$0xff]  }
  0x1a   : > { %v1610_v2 = vld [vmem:[%s1847_s23 + $0x104] ss:$8 sps:$4 sm:$0xff]   ;;  %786 = vmatprep.subr.bf16.mxu0 %v1608_v1  ;;  %v1613_v4 = vld [vmem:[%s1847_s23 + $0x100] ss:$8 sps:$4 sm:$0xff]   ;;  %v1616_v6 = vld [vmem:[%s1847_s23 + $0x114] ss:$8 sps:$4 sm:$0xff]  }
  0x1b   : > { %827 = vmatprep.subr.bf16.mxu1 %v1610_v2  ;;  %787 = vmatpush1.bf16.msra.mxu0 %v1612_v3  ;;  %v1618_v7 = vld [vmem:[%s1847_s23 + $0x10] ss:$8 sps:$4 sm:$0xff]   ;;  %v1620_v9 = vld [vmem:[%s1847_s23 + $0x24] ss:$8 sps:$4 sm:$0xff]   ;;  %v1624_v11 = vld [vmem:[%s1847_s23 + $0x20] ss:$8 sps:$4 sm:$0xff]  }
  0x1c   : > { %828 = vmatpush1.bf16.msra.mxu1 %v1613_v4  ;;  %788 = vmatprep.subr.bf16.mxu0 %v1614_v5  ;;  %v1619_v8 = vld [vmem:[%s1847_s23 + $0x110] ss:$8 sps:$4 sm:$0xff]   ;;  %v1622_v10 = vld [vmem:[%s1847_s23 + $0x124] ss:$8 sps:$4 sm:$0xff]   ;;  %v1625_v12 = vld [vmem:[%s1847_s23 + $0x120] ss:$8 sps:$4 sm:$0xff]  }
  0x1d   : > { %829 = vmatprep.subr.bf16.mxu1 %v1616_v6  ;;  %v1626_v13 = vld [vmem:[%s1847_s23 + $0x34] ss:$8 sps:$4 sm:$0xff]   ;;  %v1630_v15 = vld [vmem:[%s1847_s23 + $0x30] ss:$8 sps:$4 sm:$0xff]   ;;  %v1632_v17 = vld [vmem:[%s1847_s23 + $0x44] ss:$8 sps:$4 sm:$0xff]  }
  0x1e   : > { %v1628_v14 = vld [vmem:[%s1847_s23 + $0x134] ss:$8 sps:$4 sm:$0xff]   ;;  %v1631_v16 = vld [vmem:[%s1847_s23 + $0x130] ss:$8 sps:$4 sm:$0xff]   ;;  %v1634_v18 = vld [vmem:[%s1847_s23 + $0x144] ss:$8 sps:$4 sm:$0xff]  }
  0x1f   : > { %789 = vmatpush1.bf16.msra.mxu0 %v1618_v7  ;;  %v1636_v19 = vld [vmem:[%s1847_s23 + $0x40] ss:$8 sps:$4 sm:$0xff]   ;;  %v1638_v21 = vld [vmem:[%s1847_s23 + $0x54] ss:$8 sps:$4 sm:$0xff]   ;;  %v1642_v23 = vld [vmem:[%s1847_s23 + $0x50] ss:$8 sps:$4 sm:$0xff]  }
  0x20   : > { %830 = vmatpush1.bf16.msra.mxu1 %v1619_v8  ;;  %790 = vmatprep.subr.bf16.mxu0 %v1620_v9  ;;  %v1637_v20 = vld [vmem:[%s1847_s23 + $0x140] ss:$8 sps:$4 sm:$0xff]   ;;  %v1640_v22 = vld [vmem:[%s1847_s23 + $0x154] ss:$8 sps:$4 sm:$0xff]   ;;  %v1643_v24 = vld [vmem:[%s1847_s23 + $0x150] ss:$8 sps:$4 sm:$0xff]  }
  0x21   : > { %831 = vmatprep.subr.bf16.mxu1 %v1622_v10  ;;  %v1644_v25 = vld [vmem:[%s1847_s23 + $0x64] ss:$8 sps:$4 sm:$0xff]   ;;  %v1648_v27 = vld [vmem:[%s1847_s23 + $0x60] ss:$8 sps:$4 sm:$0xff]   ;;  %v1650_v29 = vld [vmem:[%s1847_s23 + $0x74] ss:$8 sps:$4 sm:$0xff]  }
  0x22   : > { %v1646_v26 = vld [vmem:[%s1847_s23 + $0x164] ss:$8 sps:$4 sm:$0xff]   ;;  %v1649_v28 = vld [vmem:[%s1847_s23 + $0x160] ss:$8 sps:$4 sm:$0xff]   ;;  %v1652_v30 = vld [vmem:[%s1847_s23 + $0x174] ss:$8 sps:$4 sm:$0xff]  }
  0x23   : > { %791 = vmatpush1.bf16.msra.mxu0 %v1624_v11  ;;  %v1654_v31 = vld [vmem:[%s1847_s23 + $0x70] ss:$8 sps:$4 sm:$0xff]   ;;  %v1656_v33 = vld [vmem:[%s1847_s23 + $0x84] ss:$8 sps:$4 sm:$0xff]   ;;  %v1660_v35 = vld [vmem:[%s1847_s23 + $0x80] ss:$8 sps:$4 sm:$0xff]  }
  0x24   : > { %832 = vmatpush1.bf16.msra.mxu1 %v1625_v12  ;;  %792 = vmatprep.subr.bf16.mxu0 %v1626_v13  ;;  %v1655_v32 = vld [vmem:[%s1847_s23 + $0x170] ss:$8 sps:$4 sm:$0xff]   ;;  %v1658_v34 = vld [vmem:[%s1847_s23 + $0x184] ss:$8 sps:$4 sm:$0xff]   ;;  %v1661_v36 = vld [vmem:[%s1847_s23 + $0x180] ss:$8 sps:$4 sm:$0xff]  }
  0x25   : > { %833 = vmatprep.subr.bf16.mxu1 %v1628_v14  ;;  %v1662_v37 = vld [vmem:[%s1847_s23 + $0x94] ss:$8 sps:$4 sm:$0xff]   ;;  %v1666_v39 = vld [vmem:[%s1847_s23 + $0x90] ss:$8 sps:$4 sm:$0xff]   ;;  %v1668_v41 = vld [vmem:[%s1847_s23 + $0xa4] ss:$8 sps:$4 sm:$0xff]  }
  0x26   : > { %v1664_v38 = vld [vmem:[%s1847_s23 + $0x194] ss:$8 sps:$4 sm:$0xff]   ;;  %v1667_v40 = vld [vmem:[%s1847_s23 + $0x190] ss:$8 sps:$4 sm:$0xff]   ;;  %v1670_v42 = vld [vmem:[%s1847_s23 + $0x1a4] ss:$8 sps:$4 sm:$0xff]  }
  0x27   : > { %793 = vmatpush1.bf16.msra.mxu0 %v1630_v15  ;;  %v1672_v43 = vld [vmem:[%s1847_s23 + $0xa0] ss:$8 sps:$4 sm:$0xff]   ;;  %v1674_v45 = vld [vmem:[%s1847_s23 + $0xb4] ss:$8 sps:$4 sm:$0xff]   ;;  %v1678_v50 = vld [vmem:[%s1847_s23 + $0xb0] ss:$8 sps:$4 sm:$0xff]  }
  0x28   : > { %834 = vmatpush1.bf16.msra.mxu1 %v1631_v16  ;;  %794 = vmatprep.subr.bf16.mxu0 %v1632_v17  ;;  %v1673_v44 = vld [vmem:[%s1847_s23 + $0x1a0] ss:$8 sps:$4 sm:$0xff]   ;;  %v1676_v46 = vld [vmem:[%s1847_s23 + $0x1b4] ss:$8 sps:$4 sm:$0xff]   ;;  %v1679_v51 = vld [vmem:[%s1847_s23 + $0x1b0] ss:$8 sps:$4 sm:$0xff]  }
  0x29   : > { %835 = vmatprep.subr.bf16.mxu1 %v1634_v18  ;;  %v386_v47 = vld [vmem:[%s1842_s19] sm:$0xff]  ;;  %v387_v49 = vld [vmem:[%s1842_s19 + $0x8] sm:$0xff]  ;;  %v1686_v57 = vld [vmem:[%s1847_s23 + $0xd4] ss:$8 sps:$4 sm:$0xff]   ;;  %vm871_vm1 = vcmask 588800   ;;  %p1432_p7 = scmp.ne.s32.totalorder %s1752_s30, 1 }
  0x2a   : > { %v1365_v48 = vcombine.high %v386_v47, %v386_v47  ;;  %v1367_v52 = vcombine.high %v387_v49, %v387_v49  ;;  %v1680_v53 = vld [vmem:[%s1847_s23 + $0xc4] ss:$8 sps:$4 sm:$0xff]   ;;  %v1684_v55 = vld [vmem:[%s1847_s23 + $0xc0] ss:$8 sps:$4 sm:$0xff]   ;;  %v1688_v58 = vld [vmem:[%s1847_s23 + $0x1d4] ss:$8 sps:$4 sm:$0xff]   ;;  %v1364_v5 = vcombine.low %v386_v47, %v386_v47  ;;  %v1366_v6 = vcombine.low %v387_v49, %v387_v49 }
  0x2b   : > { %795 = vmatpush1.bf16.msra.mxu0 %v1636_v19  ;;  %v1682_v54 = vld [vmem:[%s1847_s23 + $0x1c4] ss:$8 sps:$4 sm:$0xff]   ;;  %v1685_v56 = vld [vmem:[%s1847_s23 + $0x1c0] ss:$8 sps:$4 sm:$0xff]   ;;  %v1690_v59 = vld [vmem:[%s1847_s23 + $0xd0] ss:$8 sps:$4 sm:$0xff]  }
  0x2c   : > { %836 = vmatpush1.bf16.msra.mxu1 %v1637_v20  ;;  %796 = vmatprep.subr.bf16.mxu0 %v1638_v21  ;;  %v1691_v60 = vld [vmem:[%s1847_s23 + $0x1d0] ss:$8 sps:$4 sm:$0xff]   ;;  %v1692_v61 = vld [vmem:[%s1847_s23 + $0xe4] ss:$8 sps:$4 sm:$0xff]   ;;  %v1696_v63 = vld [vmem:[%s1847_s23 + $0xe0] ss:$8 sps:$4 sm:$0xff]  }
  0x2d   : > { %837 = vmatprep.subr.bf16.mxu1 %v1640_v22  ;;  %818 = vmatprep.mubr.bf16.mxu0 %v1365_v48  ;;  %v1694_v62 = vld [vmem:[%s1847_s23 + $0x1e4] ss:$8 sps:$4 sm:$0xff]   ;;  %v1697_v0 = vld [vmem:[%s1847_s23 + $0x1e0] ss:$8 sps:$4 sm:$0xff]   ;;  %v1698_v1 = vld [vmem:[%s1847_s23 + $0xf4] ss:$8 sps:$4 sm:$0xff]  }
  0x2e   : > { %859 = vmatprep.mubr.bf16.mxu1 %v1367_v52  ;;  %v1700_v2 = vld [vmem:[%s1847_s23 + $0x1f4] ss:$8 sps:$4 sm:$0xff]   ;;  %v1702_v3 = vld [vmem:[%s1847_s23 + $0xf0] ss:$8 sps:$4 sm:$0xff]   ;;  %v384_v8 = vld [vmem:[#allocation2] sm:$0xff] }
  0x2f   : > { %797 = vmatpush1.bf16.msra.mxu0 %v1642_v23  ;;  %v1703_v4 = vld [vmem:[%s1847_s23 + $0x1f0] ss:$8 sps:$4 sm:$0xff]   ;;  %v385_v12 = vld [vmem:[#allocation2 + $0x8] sm:$0xff]  ;;  %v895_v23 = vld [vmem:[%s2366_s3] sm:$0xff] (!%p1432_p7) }
  0x30   : > { %838 = vmatpush1.bf16.msra.mxu1 %v1643_v24  ;;  %798 = vmatprep.subr.bf16.mxu0 %v1644_v25  ;;  %v896_v21 = vld [vmem:[%s2366_s3 + $0x8] sm:$0xff] (!%p1432_p7)  ;;  %v898_v22 = vld [vmem:[%s2366_s3 + $0x18] sm:$0xff] (!%p1432_p7)  ;;  %v897_v25 = vld [vmem:[%s2366_s3 + $0x10] sm:$0xff] (!%p1432_p7) }
  0x31   : > { %839 = vmatprep.subr.bf16.mxu1 %v1646_v26  ;;  %v1442_v24 = vpack.c.bf16 (!%p1432_p7), %v898_v22, %v896_v21  ;;  %v900_v26 = vld [vmem:[%s2366_s3 + $0x28] sm:$0xff] (!%p1432_p7) }
  0x32   : > { %v916_v52 = vld [vmem:[%s2366_s3 + $0xa8] sm:$0xff] (!%p1432_p7) }
  0x33   : > { %799 = vmatpush1.bf16.msra.mxu0 %v1648_v27  ;;  %v902_v27 = vld [vmem:[%s2366_s3 + $0x38] sm:$0xff] (!%p1432_p7) }
  0x34   : > { %840 = vmatpush1.bf16.msra.mxu1 %v1649_v28  ;;  %800 = vmatprep.subr.bf16.mxu0 %v1650_v29  ;;  %v1444_v28 = vpack.c.bf16 (!%p1432_p7), %v897_v25, %v895_v23  ;;  %v1446_v29 = vpack.c.bf16 (!%p1432_p7), %v902_v27, %v900_v26  ;;  %v1041_v23 = vld [vmem:[%s2368_s5 + $0x40] sm:$0xff] (!%p1432_p7)  ;;  %v1046_v26 = vld [vmem:[%s2368_s5 + $0x68] sm:$0xff] (!%p1432_p7)  ;;  %v1048_v27 = vld [vmem:[%s2368_s5 + $0x78] sm:$0xff] (!%p1432_p7) }
  0x35   : > { %841 = vmatprep.subr.bf16.mxu1 %v1652_v30  ;;  %v899_v30 = vld [vmem:[%s2366_s3 + $0x20] sm:$0xff] (!%p1432_p7) }
  0x37   : > { %801 = vmatpush1.bf16.msra.mxu0 %v1654_v31  ;;  %v901_v31 = vld [vmem:[%s2366_s3 + $0x30] sm:$0xff] (!%p1432_p7) }
  0x38   : > { %842 = vmatpush1.bf16.msra.mxu1 %v1655_v32  ;;  %802 = vmatprep.subr.bf16.mxu0 %v1656_v33  ;;  %v904_v32 = vld [vmem:[%s2366_s3 + $0x48] sm:$0xff] (!%p1432_p7)  ;;  %v906_v33 = vld [vmem:[%s2366_s3 + $0x58] sm:$0xff] (!%p1432_p7) }
  0x39   : > { %843 = vmatprep.subr.bf16.mxu1 %v1658_v34  ;;  %v1448_v34 = vpack.c.bf16 (!%p1432_p7), %v901_v31, %v899_v30  ;;  %v925_v30 = vld [vmem:[%s2366_s3 + $0xf0] sm:$0xff] (!%p1432_p7)  ;;  %v928_v31 = vld [vmem:[%s2366_s3 + $0x108] sm:$0xff] (!%p1432_p7) }
  0x3b   : > { %803 = vmatpush1.bf16.msra.mxu0 %v1660_v35  ;;  %v1450_v35 = vpack.c.bf16 (!%p1432_p7), %v906_v33, %v904_v32  ;;  %v930_v32 = vld [vmem:[%s2366_s3 + $0x118] sm:$0xff] (!%p1432_p7) }
  0x3c   : > { %844 = vmatpush1.bf16.msra.mxu1 %v1661_v36  ;;  %804 = vmatprep.subr.bf16.mxu0 %v1662_v37  ;;  %v903_v36 = vld [vmem:[%s2366_s3 + $0x40] sm:$0xff] (!%p1432_p7)  ;;  %v905_v37 = vld [vmem:[%s2366_s3 + $0x50] sm:$0xff] (!%p1432_p7) }
  0x3d   : > { %845 = vmatprep.subr.bf16.mxu1 %v1664_v38  ;;  %v908_v38 = vld [vmem:[%s2366_s3 + $0x68] sm:$0xff] (!%p1432_p7) }
  0x3f   : > { %805 = vmatpush1.bf16.msra.mxu0 %v1666_v39  ;;  %v910_v39 = vld [vmem:[%s2366_s3 + $0x78] sm:$0xff] (!%p1432_p7) }
  0x40   : > { %846 = vmatpush1.bf16.msra.mxu1 %v1667_v40  ;;  %806 = vmatprep.subr.bf16.mxu0 %v1668_v41  ;;  %v881_v40 = vlaneseq (!%p1432_p7)  ;;  %v1452_v41 = vpack.c.bf16 (!%p1432_p7), %v905_v37, %v903_v36  ;;  %v1047_v36 = vld [vmem:[%s2368_s5 + $0x70] sm:$0xff] (!%p1432_p7) }
  0x41   : > { %847 = vmatprep.subr.bf16.mxu1 %v1670_v42  ;;  %v1454_v42 = vpack.c.bf16 (!%p1432_p7), %v910_v39, %v908_v38  ;;  %v1050_v38 = vld [vmem:[%s2368_s5 + $0x88] sm:$0xff] (!%p1432_p7)  ;;  %v1052_v39 = vld [vmem:[%s2368_s5 + $0x98] sm:$0xff] (!%p1432_p7) }
  0x42   : > { %v1972_v47 = vshrl.u32 (!%p1432_p7), %v881_v40, 7  ;;  %v1474_v40 = vpack.c.bf16 (!%p1432_p7), %v930_v32, %v928_v31  ;;  %v1067_v31 = vld [vmem:[%s2368_s5 + $0x110] sm:$0xff] (!%p1432_p7)  ;;  %v1070_v32 = vld [vmem:[%s2368_s5 + $0x128] sm:$0xff] (!%p1432_p7) }
  0x43   : > { %807 = vmatpush1.bf16.msra.mxu0 %v1672_v43  ;;  %v907_v43 = vld [vmem:[%s2366_s3 + $0x60] sm:$0xff] (!%p1432_p7) }
  0x44   : > { %848 = vmatpush1.bf16.msra.mxu1 %v1673_v44  ;;  %808 = vmatprep.subr.bf16.mxu0 %v1674_v45  ;;  %v909_v44 = vld [vmem:[%s2366_s3 + $0x70] sm:$0xff] (!%p1432_p7)  ;;  %v912_v45 = vld [vmem:[%s2366_s3 + $0x88] sm:$0xff] (!%p1432_p7) }
  0x45   : > { %849 = vmatprep.subr.bf16.mxu1 %v1676_v46  ;;  %v914_v46 = vld [vmem:[%s2366_s3 + $0x98] sm:$0xff] (!%p1432_p7)  ;;  %v1456_v48 = vpack.c.bf16 (!%p1432_p7), %v909_v44, %v907_v43  ;;  %v932_v43 = vld [vmem:[%s2366_s3 + $0x128] sm:$0xff] (!%p1432_p7) }
  0x46   : > { %v1458_v49 = vpack.c.bf16 (!%p1432_p7), %v914_v46, %v912_v45  ;;  %v934_v44 = vld [vmem:[%s2366_s3 + $0x138] sm:$0xff] (!%p1432_p7)  ;;  %v1506_v46 = vpack.c.bf16 (!%p1432_p7), %v1052_v39, %v1050_v38  ;;  %v1069_v38 = vld [vmem:[%s2368_s5 + $0x120] sm:$0xff] (!%p1432_p7)  ;;  %v1071_v39 = vld [vmem:[%s2368_s5 + $0x130] sm:$0xff] (!%p1432_p7) }
  0x47   : > { %809 = vmatpush1.bf16.msra.mxu0 %v1678_v50  ;;  %v911_v50 = vld [vmem:[%s2366_s3 + $0x80] sm:$0xff] (!%p1432_p7) }
  0x48   : > { %850 = vmatpush1.bf16.msra.mxu1 %v1679_v51  ;;  %810 = vmatprep.subr.bf16.mxu0 %v1680_v53  ;;  %v913_v51 = vld [vmem:[%s2366_s3 + $0x90] sm:$0xff] (!%p1432_p7)  ;;  %v918_v53 = vld [vmem:[%s2366_s3 + $0xb8] sm:$0xff] (!%p1432_p7) }
  0x49   : > { %851 = vmatprep.subr.bf16.mxu1 %v1682_v54  ;;  %v1987_v54 = vsub.s32 (!%p1432_p7), 1, %v1972_v47 }
  0x4b   : > { %811 = vmatpush1.bf16.msra.mxu0 %v1684_v55  ;;  %v915_v55 = vld [vmem:[%s2366_s3 + $0xa0] sm:$0xff] (!%p1432_p7) }
  0x4c   : > { %852 = vmatpush1.bf16.msra.mxu1 %v1685_v56  ;;  %812 = vmatprep.subr.bf16.mxu0 %v1686_v57  ;;  %v1460_v56 = vpack.c.bf16 (!%p1432_p7), %v913_v51, %v911_v50  ;;  %v917_v57 = vld [vmem:[%s2366_s3 + $0xb0] sm:$0xff] (!%p1432_p7)  ;;  %v1054_v51 = vld [vmem:[%s2368_s5 + $0xa8] sm:$0xff] (!%p1432_p7) }
  0x4d   : > { %853 = vmatprep.subr.bf16.mxu1 %v1688_v58  ;;  %v920_v58 = vld [vmem:[%s2366_s3 + $0xc8] sm:$0xff] (!%p1432_p7) }
  0x4f   : > { %813 = vmatpush1.bf16.msra.mxu0 %v1690_v59  ;;  %v922_v59 = vld [vmem:[%s2366_s3 + $0xd8] sm:$0xff] (!%p1432_p7) }
  0x50   : > { %854 = vmatpush1.bf16.msra.mxu1 %v1691_v60  ;;  %814 = vmatprep.subr.bf16.mxu0 %v1692_v61  ;;  %v1462_v60 = vpack.c.bf16 (!%p1432_p7), %v918_v53, %v916_v52  ;;  %v1056_v52 = vld [vmem:[%s2368_s5 + $0xb8] sm:$0xff] (!%p1432_p7)  ;;  %v1478_v53 = vpack.c.bf16 (!%p1432_p7), %v934_v44, %v932_v43  ;;  %v1073_v44 = vld [vmem:[%s2368_s5 + $0x140] sm:$0xff] (!%p1432_p7) }
  0x51   : > { %855 = vmatprep.subr.bf16.mxu1 %v1694_v62  ;;  %v2004_v62 = vld [vmem:[%s2365_s2] sm:$0x3] (!%p1432_p7) }
  0x53   : > { %815 = vmatpush1.bf16.msra.mxu0 %v1696_v63  ;;  %v1034_v63 = vld [vmem:[%s2368_s5 + $0x8] sm:$0xff] (!%p1432_p7) }
  0x54   : > { %856 = vmatpush1.bf16.msra.mxu1 %v1697_v0  ;;  %816 = vmatprep.subr.bf16.mxu0 %v1698_v1  ;;  %v888_v0 = vrot.slane (!%p1432_p7), %v2004_v62, %v1987_v54  ;;  %v1036_v1 = vld [vmem:[%s2368_s5 + $0x18] sm:$0xff] (!%p1432_p7) }
  0x55   : > { %857 = vmatprep.subr.bf16.mxu1 %v1700_v2  ;;  %v1033_v2 = vld [vmem:[%s2368_s5] sm:$0xff] (!%p1432_p7) }
  0x57   : > { %817 = vmatpush1.bf16.msra.mxu0 %v1702_v3  ;;  %v1035_v3 = vld [vmem:[%s2368_s5 + $0x10] sm:$0xff] (!%p1432_p7) }
  0x58   : > { %858 = vmatpush1.bf16.msra.mxu1 %v1703_v4  ;;  %1443 = vmatprep.subr.bf16.mxu0 (!%p1432_p7), %v1442_v24  ;;  %v1490_v4 = vpack.c.bf16 (!%p1432_p7), %v1036_v1, %v1034_v63  ;;  %v1043_v24 = vld [vmem:[%s2368_s5 + $0x50] sm:$0xff] (!%p1432_p7)  ;;  %v1058_v1 = vld [vmem:[%s2368_s5 + $0xc8] sm:$0xff] (!%p1432_p7) }
  0x59   : > { %v1500_v33 = vpack.c.bf16 (!%p1432_p7), %v1043_v24, %v1041_v23  ;;  %v1055_v63 = vld [vmem:[%s2368_s5 + $0xb0] sm:$0xff] (!%p1432_p7) }
  0x5a   : > { %819 = vmatmul.mubr.bf16.vlgmr.msra.gmra.mrb[0].mxu0 %v1364_v5  ;;  %v1492_v5 = vpack.c.bf16 (!%p1432_p7), %v1035_v3, %v1033_v2  ;;  %1491 = vmatprep.subr.bf16.mxu1 (!%p1432_p7), %v1490_v4  ;;  %v1060_v2 = vld [vmem:[%s2368_s5 + $0xd8] sm:$0xff] (!%p1432_p7)  ;;  %v935_v4 = vld [vmem:[%s2366_s3 + $0x140] sm:$0xff] (!%p1432_p7)  ;;  %v1063_v23 = vld [vmem:[%s2368_s5 + $0xf0] sm:$0xff] (!%p1432_p7) }
  0x5b   : > { %860 = vmatmul.mubr.bf16.vlgmr.msra.gmra.mrb[0].mxu1 %v1366_v6  ;;  %1445 = vmatpush1.bf16.msra.mxu0 (!%p1432_p7), %v1444_v28  ;;  %v1038_v6 = vld [vmem:[%s2368_s5 + $0x28] sm:$0xff] (!%p1432_p7) }
  0x5c   : > { %1447 = vmatprep.subr.bf16.mxu0 (!%p1432_p7), %v1446_v29  ;;  %1493 = vmatpush1.bf16.msra.mxu1 (!%p1432_p7), %v1492_v5  ;;  %v923_v29 = vld [vmem:[%s2366_s3 + $0xe0] sm:$0xff] (!%p1432_p7)  ;;  %v937_v5 = vld [vmem:[%s2366_s3 + $0x150] sm:$0xff] (!%p1432_p7) }
  0x5d   : > { %v1472_v37 = vpack.c.bf16 (!%p1432_p7), %v925_v30, %v923_v29  ;;  %v1065_v30 = vld [vmem:[%s2368_s5 + $0x100] sm:$0xff] (!%p1432_p7) }
  0x5f   : > { %1449 = vmatpush1.bf16.msra.mxu0 (!%p1432_p7), %v1448_v34  ;;  %v1502_v34 = vpack.c.bf16 (!%p1432_p7), %v1048_v27, %v1046_v26  ;;  %v944_v27 = vld [vmem:[%s2366_s3 + $0x188] sm:$0xff] (!%p1432_p7) }
  0x60   : > { %1451 = vmatprep.subr.bf16.mxu0 (!%p1432_p7), %v1450_v35  ;;  %v1045_v35 = vld [vmem:[%s2368_s5 + $0x60] sm:$0xff] (!%p1432_p7) }
  0x61   : > { %v1504_v45 = vpack.c.bf16 (!%p1432_p7), %v1047_v36, %v1045_v35  ;;  %v1524_v36 = vpack.c.bf16 (!%p1432_p7), %v1067_v31, %v1065_v30 }
  0x63   : > { %1453 = vmatpush1.bf16.msra.mxu0 (!%p1432_p7), %v1452_v41  ;;  %v927_v41 = vld [vmem:[%s2366_s3 + $0x100] sm:$0xff] (!%p1432_p7) }
  0x64   : > { %1455 = vmatprep.subr.bf16.mxu0 (!%p1432_p7), %v1454_v42  ;;  %v929_v42 = vld [vmem:[%s2366_s3 + $0x110] sm:$0xff] (!%p1432_p7) }
  0x65   : > { %v1476_v50 = vpack.c.bf16 (!%p1432_p7), %v929_v42, %v927_v41  ;;  %v1076_v41 = vld [vmem:[%s2368_s5 + $0x158] sm:$0xff] (!%p1432_p7)  ;;  %v1528_v42 = vpack.c.bf16 (!%p1432_p7), %v1071_v39, %v1069_v38  ;;  %v1195_v39 = vld [vmem:[%s2370_s7 + $0xc0] sm:$0xff] (!%p1432_p7) }
  0x67   : > { %1457 = vmatpush1.bf16.msra.mxu0 (!%p1432_p7), %v1456_v48  ;;  %v1049_v48 = vld [vmem:[%s2368_s5 + $0x80] sm:$0xff] (!%p1432_p7) }
  0x68   : > { %1459 = vmatprep.subr.bf16.mxu0 (!%p1432_p7), %v1458_v49  ;;  %v1051_v49 = vld [vmem:[%s2368_s5 + $0x90] sm:$0xff] (!%p1432_p7) }
  0x6b   : > { %1461 = vmatpush1.bf16.msra.mxu0 (!%p1432_p7), %v1460_v56  ;;  %v933_v56 = vld [vmem:[%s2366_s3 + $0x130] sm:$0xff] (!%p1432_p7) }
  0x6c   : > { %1463 = vmatprep.subr.bf16.mxu0 (!%p1432_p7), %v1462_v60  ;;  %v1510_v60 = vpack.c.bf16 (!%p1432_p7), %v1056_v52, %v1054_v51  ;;  %v1077_v51 = vld [vmem:[%s2368_s5 + $0x160] sm:$0xff] (!%p1432_p7)  ;;  %v1079_v52 = vld [vmem:[%s2368_s5 + $0x170] sm:$0xff] (!%p1432_p7) }
 0x12d   : > { %v820_v7 = vpop.f32.mrb[0].mxu0 }
 0x12e   : > { %v861_v9 = vpop.f32.mrb[0].mxu1  ;;  %v822_v11 = vpop.f32.mrb[1].mxu0  ;;  %876 = sbr.rel (%p1432_p7) target bundleno = 986 (0x3da), region = 64 }
 0x12f   : > { %v862_v10 = vadd.f32 %v861_v9, %v820_v7  ;;  %v863_v13 = vpop.f32.mrb[1].mxu1  ;;  %v824_v15 = vpop.f32.mrb[2].mxu0  ;;  %v1040_v7 = vld [vmem:[%s2368_s5 + $0x38] sm:$0xff] (!%p1432_p7)  ;;  %v1464_v9 = vpack.c.bf16 (!%p1432_p7), %v917_v57, %v915_v55  ;;  %v931_v55 = vld [vmem:[%s2366_s3 + $0x120] sm:$0xff] (!%p1432_p7)  ;;  %v936_v57 = vld [vmem:[%s2366_s3 + $0x148] sm:$0xff] (!%p1432_p7) }
 0x130   : > { %v864_v14 = vadd.f32 %v863_v13, %v822_v11  ;;  %v865_v16 = vpop.f32.mrb[2].mxu1  ;;  %v825_v18 = vpop.f32.mrb[3].mxu0  ;;  %v1494_v11 = vpack.c.bf16 (!%p1432_p7), %v1040_v7, %v1038_v6  ;;  %v1042_v13 = vld [vmem:[%s2368_s5 + $0x48] sm:$0xff] (!%p1432_p7)  ;;  %v1466_v15 = vpack.c.bf16 (!%p1432_p7), %v922_v59, %v920_v58  ;;  %v938_v58 = vld [vmem:[%s2366_s3 + $0x158] sm:$0xff] (!%p1432_p7)  ;;  %v1508_v59 = vpack.c.bf16 (!%p1432_p7), %v1051_v49, %v1049_v48 }
 0x131   : > { %v868_v17 = vadd.f32 %v862_v10, %v384_v8  ;;  %v866_v19 = vpop.f32.mrb[3].mxu1  ;;  %v1037_v8 = vld [vmem:[%s2368_s5 + $0x20] sm:$0xff] (!%p1432_p7)  ;;  %v924_v18 = vld [vmem:[%s2366_s3 + $0xe8] sm:$0xff] (!%p1432_p7)  ;;  %1465 = vmatpush1.bf16.msra.mxu0 (!%p1432_p7), %v1464_v9  ;;  %v1482_v3 = vpack.c.bf16 (!%p1432_p7), %v938_v58, %v936_v57  ;;  %v2142_v6 = vsub.s32 (!%p1432_p7), 0, %v1972_v47  ;;  %v1059_v47 = vld [vmem:[%s2368_s5 + $0xd0] sm:$0xff] (!%p1432_p7) }
 0x132   : > { %v869_v20 = vadd.f32 %v864_v14, %v385_v12  ;;  %v1039_v12 = vld [vmem:[%s2368_s5 + $0x30] sm:$0xff] (!%p1432_p7)  ;;  %v1044_v14 = vld [vmem:[%s2368_s5 + $0x58] sm:$0xff] (!%p1432_p7)  ;;  %v919_v16 = vld [vmem:[%s2366_s3 + $0xc0] sm:$0xff] (!%p1432_p7)  ;;  %1495 = vmatprep.subr.bf16.mxu1 (!%p1432_p7), %v1494_v11  ;;  %1467 = vmatprep.subr.bf16.mxu0 (!%p1432_p7), %v1466_v15 }
 0x133   : > { %870 = vst [vmem:[#allocation2] sm:$0xff] %v868_v17  ;;  %v921_v17 = vld [vmem:[%s2366_s3 + $0xd0] sm:$0xff] (!%p1432_p7)  ;;  %v926_v19 = vld [vmem:[%s2366_s3 + $0xf8] sm:$0xff] (!%p1432_p7)  ;;  %v1496_v21 = vpack.c.bf16 (!%p1432_p7), %v1039_v12, %v1037_v8  ;;  %v1498_v22 = vpack.c.bf16 (!%p1432_p7), %v1044_v14, %v1042_v13  ;;  %v940_v7 = vld [vmem:[%s2366_s3 + $0x168] sm:$0xff] (!%p1432_p7)  ;;  %v1484_v12 = vpack.c.bf16 (!%p1432_p7), %v937_v5, %v935_v4 }
 0x134   : > { %872 = vst.msk [vmem:[#allocation2 + $0x8] sm:$0xff] %vm871_vm1, %v869_v20  ;;  %v1468_v25 = vpack.c.bf16 (!%p1432_p7), %v921_v17, %v919_v16  ;;  %v1470_v28 = vpack.c.bf16 (!%p1432_p7), %v926_v19, %v924_v18  ;;  %v942_v8 = vld [vmem:[%s2366_s3 + $0x178] sm:$0xff] (!%p1432_p7)  ;;  %v1057_v11 = vld [vmem:[%s2368_s5 + $0xc0] sm:$0xff] (!%p1432_p7)  ;;  %v1062_v13 = vld [vmem:[%s2368_s5 + $0xe8] sm:$0xff] (!%p1432_p7)  ;;  %v884_v18 = vrot.slane (!%p1432_p7), %v2004_v62, %v2142_v6 }
 0x135   : > { %1497 = vmatpush1.bf16.msra.mxu1 %v1496_v21  ;;  %v1064_v14 = vld [vmem:[%s2368_s5 + $0xf8] sm:$0xff]  ;;  %v1486_v15 = vpack.c.bf16 %v942_v8, %v940_v7  ;;  %v939_v16 = vld [vmem:[%s2366_s3 + $0x160] sm:$0xff]  ;;  %v941_v17 = vld [vmem:[%s2366_s3 + $0x170] sm:$0xff] }
 0x136   : > { %1499 = vmatprep.subr.bf16.mxu1 %v1498_v22  ;;  %1469 = vmatpush1.bf16.msra.mxu0 %v1468_v25  ;;  %v1518_v21 = vpack.c.bf16 %v1064_v14, %v1062_v13  ;;  %v1061_v22 = vld [vmem:[%s2368_s5 + $0xe0] sm:$0xff]  ;;  %v1488_v24 = vpack.c.bf16 %v941_v17, %v939_v16  ;;  %v1066_v25 = vld [vmem:[%s2368_s5 + $0x108] sm:$0xff]  ;;  %v1068_v62 = vld [vmem:[%s2368_s5 + $0x118] sm:$0xff] }
 0x137   : > { %1471 = vmatprep.subr.bf16.mxu0 %v1470_v28  ;;  %v1520_v28 = vpack.c.bf16 %v1063_v23, %v1061_v22  ;;  %v1522_v29 = vpack.c.bf16 %v1068_v62, %v1066_v25  ;;  %v1078_v48 = vld [vmem:[%s2368_s5 + $0x168] sm:$0xff]  ;;  %v1080_v49 = vld [vmem:[%s2368_s5 + $0x178] sm:$0xff]  ;;  %v1171_v57 = vld [vmem:[%s2370_s7] sm:$0xff] }
 0x138   : > { %v1172_v58 = vld [vmem:[%s2370_s7 + $0x8] sm:$0xff]  ;;  %v1177_v4 = vld [vmem:[%s2370_s7 + $0x30] sm:$0xff]  ;;  %v1178_v5 = vld [vmem:[%s2370_s7 + $0x38] sm:$0xff] }
 0x139   : > { %1501 = vmatpush1.bf16.msra.mxu1 %v1500_v33  ;;  %v1072_v33 = vld [vmem:[%s2368_s5 + $0x138] sm:$0xff]  ;;  %v1548_v7 = vpack.c.bf16 %v1178_v5, %v1177_v4  ;;  %v1179_v8 = vld [vmem:[%s2370_s7 + $0x40] sm:$0xff]  ;;  %v1184_v14 = vld [vmem:[%s2370_s7 + $0x68] sm:$0xff] }
 0x13a   : > { %1503 = vmatprep.subr.bf16.mxu1 %v1502_v34  ;;  %1473 = vmatpush1.bf16.msra.mxu0 %v1472_v37  ;;  %v877_v19 = vld [vmem:[#allocation2] sm:$0xff]  ;;  %v1526_v37 = vpack.c.bf16 %v1072_v33, %v1070_v32  ;;  %v1185_v16 = vld [vmem:[%s2370_s7 + $0x70] sm:$0xff]  ;;  %v1186_v17 = vld [vmem:[%s2370_s7 + $0x78] sm:$0xff] }
 0x13b   : > { %v878_v61 = vld [vmem:[#allocation2 + $0x8] sm:$0xff]  ;;  %1475 = vmatprep.subr.bf16.mxu0 %v1474_v40  ;;  %v891_v26 = vadd.f32 %v884_v18, %v877_v19  ;;  %v943_v34 = vld [vmem:[%s2366_s3 + $0x180] sm:$0xff]  ;;  %v1560_v18 = vpack.c.bf16 %v1186_v17, %v1185_v16  ;;  %v1189_v22 = vld [vmem:[%s2370_s7 + $0x90] sm:$0xff] }
 0x13c   : > { %v892_v10 = vadd.f32 %v888_v0, %v878_v61  ;;  %v1053_v61 = vld [vmem:[%s2368_s5 + $0xa0] sm:$0xff]  ;;  %v1480_v0 = vpack.c.bf16 %v933_v56, %v931_v55  ;;  %v1074_v40 = vld [vmem:[%s2368_s5 + $0x148] sm:$0xff]  ;;  %v1190_v23 = vld [vmem:[%s2370_s7 + $0x98] sm:$0xff] }
 0x13d   : > { %1505 = vmatpush1.bf16.msra.mxu1 %v1504_v45  ;;  %v1512_v9 = vpack.c.bf16 %v1055_v63, %v1053_v61  ;;  %v893_v35 = vmax.f32 %v891_v26, 0.0  ;;  %v1530_v43 = vpack.c.bf16 %v1076_v41, %v1074_v40  ;;  %v1075_v45 = vld [vmem:[%s2368_s5 + $0x150] sm:$0xff]  ;;  %v1082_v55 = vld [vmem:[%s2368_s5 + $0x188] sm:$0xff]  ;;  %v1081_v56 = vld [vmem:[%s2368_s5 + $0x180] sm:$0xff]  ;;  %v1539_v61 = vpack.c.bf16 %v1172_v58, %v1171_v57 }
 0x13e   : > { %v894_v20 = vmax.f32 %v892_v10, 0.0  ;;  %1507 = vmatprep.subr.bf16.mxu1 %v1506_v46  ;;  %1477 = vmatpush1.bf16.msra.mxu0 %v1476_v50  ;;  %v1514_v10 = vpack.c.bf16 %v1060_v2, %v1058_v1  ;;  %v1532_v46 = vpack.c.bf16 %v1075_v45, %v1073_v44  ;;  %v1534_v50 = vpack.c.bf16 %v1080_v49, %v1078_v48  ;;  %v1174_v63 = vld [vmem:[%s2370_s7 + $0x18] sm:$0xff]  ;;  %v1175_v1 = vld [vmem:[%s2370_s7 + $0x20] sm:$0xff]  ;;  %v1176_v2 = vld [vmem:[%s2370_s7 + $0x28] sm:$0xff] }
 0x13f   : > { %1479 = vmatprep.subr.bf16.mxu0 %v1478_v53  ;;  %v1536_v53 = vpack.c.bf16 %v1079_v52, %v1077_v51  ;;  %v1183_v13 = vld [vmem:[%s2370_s7 + $0x60] sm:$0xff]  ;;  %v1192_v62 = vld [vmem:[%s2370_s7 + $0xa8] sm:$0xff]  ;;  %v1764_v40 = vmov 0.0  }
 0x140   : > { %1433 = vmatprep.mubr.msk.f32.mxu0 %vm871_vm1, %v894_v20  ;;  %v1516_v20 = vpack.c.bf16 %v1059_v47, %v1057_v11  ;;  %v1181_v11 = vld [vmem:[%s2370_s7 + $0x50] sm:$0xff]  ;;  %v1182_v47 = vld [vmem:[%s2370_s7 + $0x58] sm:$0xff]  ;;  %v1187_v19 = vld [vmem:[%s2370_s7 + $0x80] sm:$0xff] }
 0x141   : > { %1509 = vmatpush1.bf16.msra.mxu1 %v1508_v59  ;;  %v1173_v59 = vld [vmem:[%s2370_s7 + $0x10] sm:$0xff]  ;;  %v1191_v25 = vld [vmem:[%s2370_s7 + $0xa0] sm:$0xff] }
 0x142   : > { %1511 = vmatprep.subr.bf16.mxu1 %v1510_v60  ;;  %1481 = vmatpush1.bf16.msra.mxu0 %v1480_v0  ;;  %v1763_v60 = vmov 0.0|0.0   ;;  %v1542_v0 = vpack.c.bf16 %v1174_v63, %v1173_v59  ;;  %v1569_v26 = vpack.c.bf16 %v1192_v62, %v1191_v25  ;;  %v1083_v41 = vld [vmem:[%s2369_s6] sm:$0x3] }
 0x143   : > { %1483 = vmatprep.subr.bf16.mxu0 %v1482_v3  ;;  %v1545_v3 = vpack.c.bf16 %v1176_v2, %v1175_v1  ;;  %v1435_v51 = vld [vmem:[%s2371_s8] ss:$0 sm:$0xff] }
 0x145   : > { %1513 = vmatpush1.bf16.msra.mxu1 %v1512_v9  ;;  %v1180_v9 = vld [vmem:[%s2370_s7 + $0x48] sm:$0xff] }
 0x146   : > { %1515 = vmatprep.subr.bf16.mxu1 %v1514_v10  ;;  %1485 = vmatpush1.bf16.msra.mxu0 %v1484_v12  ;;  %v1551_v10 = vpack.c.bf16 %v1180_v9, %v1179_v8  ;;  %v1554_v12 = vpack.c.bf16 %v1182_v47, %v1181_v11 }
 0x147   : > { %1487 = vmatprep.subr.bf16.mxu0 %v1486_v15  ;;  %v1557_v15 = vpack.c.bf16 %v1184_v14, %v1183_v13 }
 0x149   : > { %1517 = vmatpush1.bf16.msra.mxu1 %v1516_v20  ;;  %v1188_v20 = vld [vmem:[%s2370_s7 + $0x88] sm:$0xff] }
 0x14a   : > { %1519 = vmatprep.subr.bf16.mxu1 %v1518_v21  ;;  %1489 = vmatpush1.bf16.msra.mxu0 %v1488_v24  ;;  %v1563_v21 = vpack.c.bf16 %v1188_v20, %v1187_v19  ;;  %v1566_v24 = vpack.c.bf16 %v1190_v23, %v1189_v22 }
 0x14b   : > { %1008 = vmatprep.subr.mxu0 %v944_v27  ;;  %v945_v27 = vld [vmem:[%s2367_s4] sm:$0x3] }
 0x14d   : > { %1521 = vmatpush1.bf16.msra.mxu1 %v1520_v28  ;;  %v950_v28 = vrot.slane %v945_v27, %v2142_v6 }
 0x14e   : > { %1523 = vmatprep.subr.bf16.mxu1 %v1522_v29  ;;  %1009 = vmatpush1.msra.mxu0 %v943_v34  ;;  %v954_v29 = vrot.slane %v945_v27, %v1987_v54 }
 0x14f   : > { %1025 = vmatmul.mubr.f32.vlgmr.msra.gmra.mrb[0].mxu0 %v893_v35  ;;  %1538 = vmatprep.subr.bf16.mxu0 %v1763_v60 }
 0x150   : > { %1540 = vmatpush1.bf16.msra.mxu0 %v1539_v61 }
 0x151   : > { %1525 = vmatpush1.bf16.msra.mxu1 %v1524_v36  ;;  %1541 = vmatprep.subr.bf16.mxu0 %v1763_v60  ;;  %v1193_v36 = vld [vmem:[%s2370_s7 + $0xb0] sm:$0xff] }
 0x152   : > { %1527 = vmatprep.subr.bf16.mxu1 %v1526_v37  ;;  %v1194_v37 = vld [vmem:[%s2370_s7 + $0xb8] sm:$0xff] }
 0x153   : > { %v1572_v38 = vpack.c.bf16 %v1194_v37, %v1193_v36 }
 0x154   : > { %1543 = vmatpush1.bf16.msra.mxu0 %v1542_v0 }
 0x155   : > { %1529 = vmatpush1.bf16.msra.mxu1 %v1528_v42  ;;  %1544 = vmatprep.subr.bf16.mxu0 %v1763_v60  ;;  %v1088_v42 = vrot.slane %v1083_v41, %v2142_v6 }
 0x156   : > { %1531 = vmatprep.subr.bf16.mxu1 %v1530_v43  ;;  %v1092_v43 = vrot.slane %v1083_v41, %v1987_v54 }
 0x158   : > { %1546 = vmatpush1.bf16.msra.mxu0 %v1545_v3 }
 0x159   : > { %1533 = vmatpush1.bf16.msra.mxu1 %v1532_v46  ;;  %1547 = vmatprep.subr.bf16.mxu0 %v1763_v60 }
 0x15a   : > { %1535 = vmatprep.subr.bf16.mxu1 %v1534_v50 }
 0x15c   : > { %1549 = vmatpush1.bf16.msra.mxu0 %v1548_v7 }
 0x15d   : > { %1537 = vmatpush1.bf16.msra.mxu1 %v1536_v53  ;;  %1550 = vmatprep.subr.bf16.mxu0 %v1763_v60 }
 0x15e   : > { %1146 = vmatprep.subr.mxu1 %v1082_v55 }
 0x160   : > { %1552 = vmatpush1.bf16.msra.mxu0 %v1551_v10 }
 0x161   : > { %1147 = vmatpush1.msra.mxu1 %v1081_v56  ;;  %1553 = vmatprep.subr.bf16.mxu0 %v1763_v60 }
 0x164   : > { %1555 = vmatpush1.bf16.msra.mxu0 %v1554_v12 }
 0x165   : > { %1556 = vmatprep.subr.bf16.mxu0 %v1763_v60 }
 0x168   : > { %1558 = vmatpush1.bf16.msra.mxu0 %v1557_v15 }
 0x169   : > { %1559 = vmatprep.subr.bf16.mxu0 %v1763_v60 }
 0x16c   : > { %1561 = vmatpush1.bf16.msra.mxu0 %v1560_v18 }
 0x16d   : > { %1562 = vmatprep.subr.bf16.mxu0 %v1763_v60 }
 0x170   : > { %1564 = vmatpush1.bf16.msra.mxu0 %v1563_v21 }
 0x171   : > { %1565 = vmatprep.subr.bf16.mxu0 %v1763_v60 }
 0x174   : > { %1567 = vmatpush1.bf16.msra.mxu0 %v1566_v24 }
 0x175   : > { %1568 = vmatprep.subr.bf16.mxu0 %v1763_v60 }
 0x178   : > { %1570 = vmatpush1.bf16.msra.mxu0 %v1569_v26 }
 0x179   : > { %1571 = vmatprep.subr.bf16.mxu0 %v1763_v60 }
 0x17c   : > { %1573 = vmatpush1.bf16.msra.mxu0 %v1572_v38 }
 0x17d   : > { %1254 = vmatprep.subr.mxu0 %v1764_v40 }
 0x180   : > { %1255 = vmatpush1.msra.mxu0 %v1195_v39 }
 0x222   : > { %v1026_v30 = vpop.f32.mrb[0].mxu0 }
 0x223   : > { %v1027_v31 = vadd.f32 %v1026_v30, %v950_v28  ;;  %v1028_v32 = vpop.f32.mrb[1].mxu0 }
 0x224   : > { %v1029_v33 = vadd.f32 %v1028_v32, %v954_v29 }
 0x225   : > { %v1031_v35 = vmax.f32 %v1027_v31, 0.0 }
 0x226   : > { %v1032_v34 = vmax.f32 %v1029_v33, 0.0 }
 0x228   : > { %1434 = vmatprep.mubr.msk.f32.mxu1 %vm871_vm1, %v1032_v34 }
 0x229   : > { %1163 = vmatmul.mubr.f32.vlgmr.msra.gmra.mrb[0].mxu1 %v1031_v35 }
 0x2fc   : > { %v1164_v44 = vpop.f32.mrb[0].mxu1 }
 0x2fd   : > { %v1165_v45 = vadd.f32 %v1164_v44, %v1088_v42  ;;  %v1166_v46 = vpop.f32.mrb[1].mxu1 }
 0x2fe   : > { %v1167_v48 = vadd.f32 %v1166_v46, %v1092_v43 }
 0x2ff   : > { %v1169_v50 = vmax.f32 %v1165_v45, 0.0 }
 0x300   : > { %v1170_v49 = vmax.f32 %v1167_v48, 0.0 }
 0x302   : > { %1436 = vmatprep.mubr.msk.f32.mxu0 %vm871_vm1, %v1170_v49 }
 0x303   : > { %1271 = vmatmul.mubr.f32.vlgmr.msra.gmra.mrb[2].mxu0 %v1169_v50 }
 0x3d6   : > { %v1272_v52 = vpop.f32.mrb[2].mxu0 }
 0x3d7   : > { %v1273_v53 = vadd.f32 %v1435_v51, %v1272_v52  ;;  %v1274_v55 = vpop.f32.mrb[3].mxu0 }
 0x3d9   : > { %1276 = vst [vmem:[#allocation3] sm:$0xff] %v1273_v53 }
 0x3da PF: > { %p2328_p8 = scmp.eq.s32.totalorder %s1354_s12, 1  ;;  %s1765_s28 = smov [#allocation3]  }
 0x3db   : > { %s1286_s29 = sshll.u32 %s1765_s28, 4  ;;  %s1287_s29 = int_to_ptr.vmem [resolvable:$true] %s1286_s29 }
 0x3dc   : > { %s1708_s14 = scalar_lea.vmem %s1287_s29, 128  ;;  %p1715_p12 = scmp.lt.s32.totalorder %s1287_s29, %s1287_s29 }
 0x3dd   : > { %p1709_p9 = scmp.ne.s32.totalorder %s1287_s29, %s1708_s14  ;;  %p1716_p13 = scmp.lt.s32.totalorder %s1708_s14, %s1708_s14 }
 0x3df   : > { %p1710_p10 = pnand %p1709_p9, %p2328_p8  ;;  %p1717_p0 = por %p1716_p13, %p1715_p12 }
 0x3e1   : > { %p1711_p11 = pneg %p1710_p10 }
 0x3e3   : > { %p1718_p1 = pnand %p1717_p0, %p1711_p11 }
 0x3e5   : > { %1721 = shalt.err (!%p1718_p1)
}
 0x3e6   : > { %s1722_s12 = scalar_lea.hbm %s2372_s9, 128 }
 0x3e7   : > { %p1723_p2 = scmp.ne.s32.totalorder %s2372_s9, %s1722_s12  ;;  %p1728_p5 = scmp.lt.u32.totalorder %s1722_s12, %s2372_s9 }
 0x3e9   : > { %p1724_p3 = pnand %p1723_p2, %p2328_p8 }
 0x3eb   : > { %p1725_p4 = pneg %p1724_p3 }
 0x3ed   : > { %p1730_p6 = pnand %p1728_p5, %p1725_p4 }
 0x3ef   : > { %1733 = shalt.err (!%p1730_p6)
}
 0x3f0   : > { %1575 = dma.vmem_to_hbm [thread:$0]  (%p2328_p8), %s1287_s29, 128, %s2372_s9, [#allocation4]  }
 0x3f1   : > { %1747 = dma.done.wait (%p2328_p8), [#allocation4], 128  }
 0x3f2   : > { %1749 = vsyncadd (%p2328_p8), [#allocation4], 4294967168 }
 0x3f3 PF: > { %s20_s11 = sadd.s32 1, %s1760_s11   ;;  %s2374_s30 = smov %s1756_s10 }
 0x3f4   : > { %p17_p7 = scmp.ge.s32.totalorder %s20_s11, 4   ;;  %s2375_s10 = smov %s2377_s13 }
 0x3f6   :  { %19 = sbr.rel (!%p17_p7) target bundleno = 2 (0x2), region = 95 }
 0x3fd   :  { %1299 = vsyncpa [#allocation4], 1 }
 0x3fe   :  { %1301 = vsyncpa [#allocation4 + $0x1], 1 }

</bundles_post_ra>
